<compile_context>
chip_gen: v7x
topology: tpu7x:2x2x1
jax: 0.10.0
libtpu: 0.0.40
codegen_flags: <defaults>
</compile_context>

<pallas_src>
import functools

import numpy as np
import jax
import jax.numpy as jnp
from jax import lax
from jax.experimental import pallas as pl
from jax.experimental.pallas import tpu as pltpu


def _length_regulator_kernel(tgt_ref,            # scalar prefetch: (B,) int32 in SMEM
                             excl_ref, cum_ref,  # (1, 1, S) int32 excl/incl cumsum
                             x_ref,              # (1, S, Hp)  x.dtype
                             out_ref):           # (1, tile_T, Hp)  x.dtype
    b = pl.program_id(0)
    t_tile = pl.program_id(1)
    tile_t = out_ref.shape[1]
    t0 = t_tile * tile_t

    @pl.when(t0 < tgt_ref[b])
    def _compute():
        excl = excl_ref[0]                                        # (1, S) int32
        cum = cum_ref[0]                                          # (1, S) int32
        t_idx = t0 + lax.broadcasted_iota(jnp.int32, (tile_t, 1), 0)
        # One-hot-per-row expansion matrix, built with int32 compares and cast
        # to x's dtype (0/1 is exact in bf16), accumulated in f32 on the MXU.
        m = jnp.logical_and(t_idx >= excl, t_idx < cum).astype(x_ref.dtype)
        out = jnp.dot(m, x_ref[0], preferred_element_type=jnp.float32)
        out_ref[0] = out.astype(out_ref.dtype)

    @pl.when(t0 >= tgt_ref[b])
    def _skip():
        # Fully padded frame tile: skip M construction + matmul, just zero it.
        out_ref[...] = jnp.zeros_like(out_ref)


@functools.partial(jax.jit, static_argnames=("max_len", "tile_t"))
def length_regulator(x, duration, src_lens, max_len, tile_t=256):
    """x: [B,S,H] float, duration: [B,S] int, src_lens: [B] int, max_len: python int."""
    B, S, H = x.shape

    # Mask durations past src_len, clamp at >= 0, cumulative sums + totals.
    dur = jnp.maximum(duration.astype(jnp.int32), 0)
    pos = jnp.arange(S, dtype=jnp.int32)[None, :]
    dur = jnp.where(pos < src_lens.astype(jnp.int32)[:, None], dur, 0)
    cum = jnp.cumsum(dur, axis=1)                    # inclusive cumsum (B, S)
    excl = cum - dur                                 # exclusive cumsum (B, S)
    tgt_len = cum[:, -1].astype(jnp.int32)           # (B,) total expanded length

    # Lane-dense hidden dim: pad H up to a multiple of 128, slice afterwards.
    hp = ((H + 127) // 128) * 128
    x_p = x if hp == H else jnp.pad(x, ((0, 0), (0, 0), (0, hp - H)))

    # Frame-axis tile: multiple of 8 (sublane) unless it spans max_len fully.
    tile_t = int(min(tile_t, max_len))
    if tile_t != max_len:
        tile_t = max(8, (tile_t // 8) * 8)
    num_t = pl.cdiv(max_len, tile_t)

    excl3 = excl.reshape(B, 1, S)
    cum3 = cum.reshape(B, 1, S)

    grid_spec = pltpu.PrefetchScalarGridSpec(
        num_scalar_prefetch=1,                       # tgt_len lives in SMEM
        grid=(B, num_t),
        in_specs=[
            pl.BlockSpec((1, 1, S), lambda b, t, tgt: (b, 0, 0)),    # excl
            pl.BlockSpec((1, 1, S), lambda b, t, tgt: (b, 0, 0)),    # cum
            pl.BlockSpec((1, S, hp), lambda b, t, tgt: (b, 0, 0)),   # x
        ],
        out_specs=pl.BlockSpec((1, tile_t, hp), lambda b, t, tgt: (b, t, 0)),
    )

    itemsize = int(jnp.dtype(x.dtype).itemsize)
    cost = pl.CostEstimate(
        flops=2 * B * num_t * tile_t * S * hp,
        transcendentals=0,
        bytes_accessed=B * (S * hp + num_t * tile_t * hp) * itemsize
        + B * S * 8 + B * 4,
    )

    out_p = pl.pallas_call(
        _length_regulator_kernel,
        out_shape=jax.ShapeDtypeStruct((B, max_len, hp), x.dtype),
        grid_spec=grid_spec,
        compiler_params=pltpu.CompilerParams(
            dimension_semantics=("parallel", "parallel")),
        cost_estimate=cost,
    )(tgt_len, excl3, cum3, x_p)

    out = out_p if hp == H else out_p[:, :, :H]
    return out, tgt_len


def _reference(xn, dn, sn, max_len):
    """Pure-numpy reference of the PyTorch module semantics (xn must be f32)."""
    B, S, H = xn.shape
    ref = np.zeros((B, max_len, H), np.float32)
    ref_tgt = np.zeros((B,), np.int32)
    for b in range(B):
        rows = []
        for i in range(S):
            d = int(dn[b, i]) if i < int(sn[b]) else 0
            rows.extend([xn[b, i]] * max(d, 0))
        ref_tgt[b] = len(rows)
        L = min(len(rows), max_len)
        if L:
            ref[b, :L] = np.stack(rows[:L], axis=0)
    return ref, ref_tgt


if __name__ == "__main__":
    key = jax.random.PRNGKey(0)
    B, S, H = 2, 8, 32
    max_len = 32

    kx, kd = jax.random.split(key)
    x = jax.random.normal(kx, (B, S, H), dtype=jnp.float32)
    duration = jax.random.randint(kd, (B, S), 1, 5, dtype=jnp.int32)
    src_lens = jnp.array([8, 5], dtype=jnp.int32)

    # f32 path, single frame tile.
    out, tgt = length_regulator(x, duration, src_lens, max_len)
    jax.block_until_ready((out, tgt))
    ref, ref_tgt = _reference(np.asarray(x), np.asarray(duration),
                              np.asarray(src_lens), max_len)
    assert np.allclose(np.asarray(out), ref, atol=1e-5), "f32 regulated output mismatch"
    assert np.array_equal(np.asarray(tgt), ref_tgt), "f32 tgt_len mismatch"

    # bf16 path, multi-tile frame grid (exercises dead-tile skip via pl.when).
    max_len2 = 64
    x_bf = x.astype(jnp.bfloat16)
    out2, tgt2 = length_regulator(x_bf, duration, src_lens, max_len2, tile_t=8)
    jax.block_until_ready((out2, tgt2))
    ref2, ref_tgt2 = _reference(np.asarray(x_bf.astype(jnp.float32)),
                                np.asarray(duration), np.asarray(src_lens), max_len2)
    assert np.allclose(np.asarray(out2.astype(jnp.float32)), ref2, atol=1e-6), \
        "bf16 regulated output mismatch"
    assert np.array_equal(np.asarray(tgt2), ref_tgt2), "bf16 tgt_len mismatch"

    print("KERNEL_OK")
</pallas_src>

<mosaic_0001>
module attributes {stable_mosaic.version = 11 : i64} {
  func.func @_length_regulator_kernel(%arg0: i32, %arg1: i32, %arg2: memref<2xi32, #tpu.memory_space<smem>>, %arg3: memref<1x1x8xi32, #tpu.memory_space<vmem>>, %arg4: memref<1x1x8xi32, #tpu.memory_space<vmem>>, %arg5: memref<1x8x128xf32, #tpu.memory_space<vmem>>, %arg6: memref<1x32x128xf32, #tpu.memory_space<vmem>>) attributes {dimension_semantics = [#tpu.dimension_semantics<parallel>, #tpu.dimension_semantics<parallel>], iteration_bounds = array<i64: 2, 1>, scalar_prefetch = 1 : i64, scratch_operands = 0 : i64, tpu.core_type = #tpu.core_type<tc>, window_params = [{transform_indices = @transform_0, window_bounds = array<i64: 1, 1, 8>}, {transform_indices = @transform_1, window_bounds = array<i64: 1, 1, 8>}, {transform_indices = @transform_2, window_bounds = array<i64: 1, 8, 128>}, {transform_indices = @transform_3, window_bounds = array<i64: 1, 32, 128>}]} {
    %c32_i32 = arith.constant 32 : i32
    %0 = arith.muli %arg1, %c32_i32 : i32
    %1 = arith.index_cast %arg0 : i32 to index
    %2 = memref.load %arg2[%1] : memref<2xi32, #tpu.memory_space<smem>>
    %3 = arith.cmpi slt, %0, %2 : i32
    %4 = arith.extui %3 : i1 to i32
    %c0_i32 = arith.constant 0 : i32
    %5 = arith.cmpi ne, %4, %c0_i32 : i32
    scf.if %5 {
      %c0 = arith.constant 0 : index
      %c0_1 = arith.constant 0 : index
      %c0_2 = arith.constant 0 : index
      %11 = vector.load %arg3[%c0, %c0_1, %c0_2] : memref<1x1x8xi32, #tpu.memory_space<vmem>>, vector<1x1x8xi32>
      %12 = vector.shape_cast %11 : vector<1x1x8xi32> to vector<1x8xi32>
      %c0_3 = arith.constant 0 : index
      %c0_4 = arith.constant 0 : index
      %c0_5 = arith.constant 0 : index
      %13 = vector.load %arg4[%c0_3, %c0_4, %c0_5] : memref<1x1x8xi32, #tpu.memory_space<vmem>>, vector<1x1x8xi32>
      %14 = vector.shape_cast %13 : vector<1x1x8xi32> to vector<1x8xi32>
      %15 = tpu.iota {dimensions = array<i32: 0>} : vector<32x1xi32>
      %16 = vector.broadcast %0 : i32 to vector<32x1xi32>
      %17 = arith.addi %16, %15 : vector<32x1xi32>
      %18 = vector.broadcast %17 : vector<32x1xi32> to vector<32x8xi32>
      %19 = vector.broadcast %12 : vector<1x8xi32> to vector<32x8xi32>
      %20 = arith.cmpi sge, %18, %19 : vector<32x8xi32>
      %21 = vector.broadcast %17 : vector<32x1xi32> to vector<32x8xi32>
      %22 = vector.broadcast %14 : vector<1x8xi32> to vector<32x8xi32>
      %23 = arith.cmpi slt, %21, %22 : vector<32x8xi32>
      %24 = arith.andi %20, %23 : vector<32x8xi1>
      %25 = arith.extui %24 : vector<32x8xi1> to vector<32x8xi32>
      %26 = arith.sitofp %25 : vector<32x8xi32> to vector<32x8xf32>
      %c0_6 = arith.constant 0 : index
      %c0_7 = arith.constant 0 : index
      %c0_8 = arith.constant 0 : index
      %27 = vector.load %arg5[%c0_6, %c0_7, %c0_8] : memref<1x8x128xf32, #tpu.memory_space<vmem>>, vector<1x8x128xf32>
      %28 = vector.shape_cast %27 : vector<1x8x128xf32> to vector<8x128xf32>
      %cst = arith.constant dense<0.000000e+00> : vector<32x128xf32>
      %29 = tpu.matmul %26, %28, %cst {dimension_numbers = #tpu.dot_dimension_numbers<[1], [0], [0], [1], [0, 0, 1, 1], [], []>} : vector<32x8xf32>, vector<8x128xf32>, vector<32x128xf32> -> vector<32x128xf32>
      %c0_9 = arith.constant 0 : index
      %c0_10 = arith.constant 0 : index
      %c0_11 = arith.constant 0 : index
      %30 = vector.load %arg6[%c0_9, %c0_10, %c0_11] : memref<1x32x128xf32, #tpu.memory_space<vmem>>, vector<1x32x128xf32>
      %31 = vector.shape_cast %30 : vector<1x32x128xf32> to vector<32x128xf32>
      %32 = vector.shape_cast %29 : vector<32x128xf32> to vector<1x32x128xf32>
      tpu.vector_store %arg6[%c0_9, %c0_10, %c0_11], %32 {strides = array<i32>} : memref<1x32x128xf32, #tpu.memory_space<vmem>>, vector<1x32x128xf32>,
    } else {
    }
    %6 = arith.index_cast %arg0 : i32 to index
    %7 = memref.load %arg2[%6] : memref<2xi32, #tpu.memory_space<smem>>
    %8 = arith.cmpi sge, %0, %7 : i32
    %9 = arith.extui %8 : i1 to i32
    %c0_i32_0 = arith.constant 0 : i32
    %10 = arith.cmpi ne, %9, %c0_i32_0 : i32
    scf.if %10 {
      %cst = arith.constant 0.000000e+00 : f32
      %11 = vector.broadcast %cst : f32 to vector<1x32x128xf32>
      %c0 = arith.constant 0 : index
      %c0_1 = arith.constant 0 : index
      %c0_2 = arith.constant 0 : index
      %12 = vector.load %arg6[%c0, %c0_1, %c0_2] : memref<1x32x128xf32, #tpu.memory_space<vmem>>, vector<1x32x128xf32>
      tpu.vector_store %arg6[%c0, %c0_1, %c0_2], %11 {strides = array<i32>} : memref<1x32x128xf32, #tpu.memory_space<vmem>>, vector<1x32x128xf32>,
    } else {
    }
    return
  }
  func.func @transform_0(%arg0: i32, %arg1: i32, %arg2: memref<2xi32, #tpu.memory_space<smem>>) -> (i32, i32, i32) {
    %c0_i32 = arith.constant 0 : i32
    %c0_i32_0 = arith.constant 0 : i32
    %c0_i32_1 = arith.constant 0 : i32
    return %arg0, %c0_i32, %c0_i32_0 : i32, i32, i32
  }
  func.func @transform_1(%arg0: i32, %arg1: i32, %arg2: memref<2xi32, #tpu.memory_space<smem>>) -> (i32, i32, i32) {
    %c0_i32 = arith.constant 0 : i32
    %c0_i32_0 = arith.constant 0 : i32
    %c0_i32_1 = arith.constant 0 : i32
    return %arg0, %c0_i32, %c0_i32_0 : i32, i32, i32
  }
  func.func @transform_2(%arg0: i32, %arg1: i32, %arg2: memref<2xi32, #tpu.memory_space<smem>>) -> (i32, i32, i32) {
    %c0_i32 = arith.constant 0 : i32
    %c0_i32_0 = arith.constant 0 : i32
    %c0_i32_1 = arith.constant 0 : i32
    return %arg0, %c0_i32, %c0_i32_0 : i32, i32, i32
  }
  func.func @transform_3(%arg0: i32, %arg1: i32, %arg2: memref<2xi32, #tpu.memory_space<smem>>) -> (i32, i32, i32) {
    %c0_i32 = arith.constant 0 : i32
    %c0_i32_0 = arith.constant 0 : i32
    return %arg0, %arg1, %c0_i32 : i32, i32, i32
  }
}

</mosaic_0001>

<bundles_post_ra>
// kernel: length_regulator.1
= control target key start
LH: loop header
LB: loop body
LE: loop exit
PB: predicated region body
PF: predicated region fallthrough
CT: control target
= control target key end

     0   :  { %s853_s0 = inlined_call_operand.vmem [shape: s32[2], index: 0, kind: input, shape index: {}]   ;;  %s854_s1 = inlined_call_operand.vmem [shape: s32[2,1,8], index: 1, kind: input, shape index: {}]   ;;  %s855_s2 = inlined_call_operand.vmem [shape: s32[2,1,8], index: 2, kind: input, shape index: {}]   ;;  %s856_s3 = inlined_call_operand.vmem [shape: f32[2,8,128], index: 3, kind: input, shape index: {}]   ;;  %s857_s4 = inlined_call_operand.hbm [shape: f32[2,32,128], index: 4, kind: output, shape index: {}]  }
   0x1   :  { %s9_s17 = sshll.u32 %s853_s0, 4  ;;  %s10_s17 = int_to_ptr.vmem [resolvable:$true] %s9_s17 }
   0x2   :  { %s583_s18 = scalar_lea.vmem %s10_s17, 16  ;;  %p588_p1 = scmp.lt.s32.totalorder %s10_s17, %s10_s17 }
   0x3   :  { %p584_p0 = scmp.ne.s32.totalorder %s10_s17, %s583_s18  ;;  %p589_p2 = scmp.lt.s32.totalorder %s583_s18, %s583_s18 }
   0x5   :  { %p590_p3 = por %p589_p2, %p588_p1 }
   0x7   :  { %p591_p4 = pnand %p590_p3, %p584_p0 }
   0x9   :  { %594 = shalt.err (!%p591_p4)  }
   0xa   :  { %s677_s19 = smov [#allocation3]  }
   0xb   :  { %12 = dma.vmem_to_smem %s10_s17, 16, %s677_s19, [#allocation2] }
   0xc   :  { %647 = dma.done.wait [#allocation2], 16 }
   0xd   :  { %648 = vsyncadd [#allocation2], 4294967280 }
   0xe   :  { %14 = sfence }
   0xf   :  { %15 = vsyncpa [#allocation5], 0 }
  0x10   :  { %17 = vsyncpa [#allocation5 + $0x1], 0  ;;  %s711_s20 = smov 0   ;;  %s713_s21 = smov 0  }
  0x11   :  { %s715_s0 = smov 0   ;;  %s717_s22 = smov 0  }
  0x12   :  { %s719_s23 = smov 0   ;;  %s721_s24 = smov 0  }
  0x13 LB: > { %s481_s25 = sadd.s32 4294967295, %s675_s24   ;;  %s482_s26 = sadd.s32 4294967294, %s675_s24   ;;  %s675_s24 = sphi %s721_s24, %s23_s24   ;;  %s671_s23 = sphi %s719_s23, %s864_s23   ;;  %s667_s22 = sphi %s717_s22, %s863_s22   ;;  %s663_s0 = sphi %s715_s0, %s862_s0   ;;  %s659_s21 = sphi %s713_s21, %s861_s21   ;;  %s655_s20 = sphi %s711_s20, %s860_s20  }
  0x14   : > { %s35_s27 = sadd.s32 1, %s671_s23  ;;  %s122_s28 = sadd.s32 1, %s663_s0 }
  0x15   : > { %p37_p5 = scmp.ge.s32.totalorder %s35_s27, 2  ;;  %p132_p6 = scmp.ne.s32.totalorder %s663_s0, %s659_s21 }
  0x16   : > { %p133_p7 = scmp.eq.s32.totalorder %s481_s25, 1  ;;  %p138_p8 = scmp.ne.s32.totalorder %s659_s21, %s655_s20 }
  0x17   : > { %s866_s27 = smov (%p37_p5, %s35_s27), 0  ;;  %p139_p10 = scmp.eq.s32.totalorder %s482_s26, 1 }
  0x18   : > { %p751_p9 = por %p133_p7, %p132_p6  ;;  %s117_s30 = ssub.s32 %s671_s23, %s866_s27 }
  0x19   : > { %p485_p11 = scmp.ge.s32.totalorder %s675_s24, 1  ;;  %p120_p12 = scmp.eq.s32.totalorder %s117_s30, 0 }
  0x1a   : > { %p758_p13 = por %p139_p10, %p138_p8  ;;  %p176_p0 = scmp.lt.s32.totalorder %s675_s24, 3 }
  0x1b   : > { %s764_s6 = scalar_select %p120_p12, %s663_s0, %s122_s28  }
  0x1c   : > { %p177_p1 = pnand %p485_p11, %p176_p0 }
  0x1d   : > { %s202_s7 = sand.u32 (!%p177_p1), 1, %s659_s21   ;;  %p205_p2 = scmp.lt.s32.totalorder (!%p177_p1), %s667_s22, 1 }
  0x1e   : > { %180 = sbr.rel (%p177_p1) target bundleno = 304 (0x130), region = 32  ;;  %s486_s8 = sshll.u32 (!%p177_p1), %s202_s7, 5 }
  0x1f   : > { %s217_s9 = sld [smem:[#allocation3 + %s667_s22]] (!%p177_p1)  ;;  %s781_s26 = scalar_lea.vmem (!%p177_p1), [#allocation4], %s486_s8 }
  0x25   : > { %s206_s10 = scalar_select %p205_p2, %s667_s22, 1 }
  0x26   : > { %p489_p3 = scmp.le.s32.totalorder %s217_s9, 0 }
  0x27   : > { %s207_s13 = scalar_lea.vmem %s854_s1, %s206_s10  ;;  %s210_s16 = scalar_lea.vmem %s855_s2, %s206_s10  ;;  %v224_v1 = vlaneseq (!%p489_p3)  ;;  %vm263_vm0 = vcmask (!%p489_p3), 64512   ;;  %v678_v8 = vmov (!%p489_p3), 0.0  }
  0x28   : > { %s487_s17 = sshll.u32 %s206_s10, 3  ;;  %221 = sbr.rel (%p489_p3) target bundleno = 264 (0x108), region = 36  ;;  %v490_v2 = vld [vmem:[%s207_s13] ss:$0 sm:$0xff] (!%p489_p3) }
  0x29   : > { %s214_s25 = scalar_lea.vmem %s856_s3, %s487_s17  ;;  %v491_v3 = vld [vmem:[%s210_s16] ss:$0 sm:$0xff] (!%p489_p3)  ;;  %v225_v4 = vshrl.u32 (!%p489_p3), %v224_v1, 7 }
  0x2a   : > { %v262_v0 = vld [vmem:[%s214_s25] sm:$0xff] (!%p489_p3) }
  0x2b   : > { %513 = vmatprep.subr.mxu0 (!%p489_p3), %v262_v0  ;;  %521 = vmatprep.subr.mxu1 (!%p489_p3), %v262_v0  ;;  %vm238_vm1 = vcmp.ge.s32.totalorder (!%p489_p3), %v225_v4, %v490_v2  ;;  %vm246_vm2 = vcmp.lt.s32.totalorder (!%p489_p3), %v225_v4, %v491_v3  ;;  %v226_v5 = vadd.s32 (!%p489_p3), 8, %v225_v4  ;;  %v227_v6 = vadd.s32 (!%p489_p3), 16, %v225_v4 }
  0x2c   : > { %514 = vmatpush3.msra.mxu0 (!%p489_p3), %v262_v0  ;;  %522 = vmatpush3.msra.mxu1 (!%p489_p3), %v262_v0  ;;  %vm250_vm3 = vmand (!%p489_p3), %vm238_vm1, %vm246_vm2  ;;  %v228_v7 = vadd.s32 (!%p489_p3), 24, %v225_v4 }
  0x2d   : > { %v492_v9 = vsel (!%p489_p3), %vm250_vm3, 1.0, %v678_v8  ;;  %vm239_vm4 = vcmp.ge.s32.totalorder (!%p489_p3), %v226_v5, %v490_v2  ;;  %vm247_vm5 = vcmp.lt.s32.totalorder (!%p489_p3), %v226_v5, %v491_v3  ;;  %vm240_vm6 = vcmp.ge.s32.totalorder (!%p489_p3), %v227_v6, %v490_v2 }
  0x2e   : > { %515 = vmatprep.mubr.msk.f32.mxu0 (!%p489_p3), %vm263_vm0, %v492_v9  ;;  %vm251_vm7 = vmand (!%p489_p3), %vm239_vm4, %vm247_vm5  ;;  %vm248_vm8 = vcmp.lt.s32.totalorder (!%p489_p3), %v227_v6, %v491_v3  ;;  %vm241_vm9 = vcmp.ge.s32.totalorder (!%p489_p3), %v228_v7, %v490_v2  ;;  %vm249_vm10 = vcmp.lt.s32.totalorder (!%p489_p3), %v228_v7, %v491_v3 }
  0x2f   : > { %v493_v10 = vsel %vm251_vm7, 1.0, %v678_v8  ;;  %vm252_vm11 = vmand %vm240_vm6, %vm248_vm8 }
  0x30   : > { %516 = vmatmul.mubr.msk.f32.vlgmr.msra.gmra.mrb[0].mxu0 %vm263_vm0, %v493_v10  ;;  %v494_v11 = vsel %vm252_vm11, 1.0, %v678_v8  ;;  %vm253_vm12 = vmand %vm241_vm9, %vm249_vm10 }
  0x31   : > { %518 = vmatprep.mubr.msk.f32.mxu1 %vm263_vm0, %v494_v11  ;;  %v495_v12 = vsel %vm253_vm12, 1.0, %v678_v8 }
  0x32   : > { %519 = vmatmul.mubr.msk.f32.vlgmr.msra.gmra.mrb[0].mxu1 %vm263_vm0, %v495_v12 }
 0x103   : > { %v517_v13 = vpop.f32.mrb[0].mxu0 }
 0x104   : > { %362 = vst [vmem:[%s781_s26 + $0x8] sm:$0xff] %v517_v13  ;;  %v342_v14 = vpop.f32.mrb[1].mxu0 }
 0x105   : > { %361 = vst [vmem:[%s781_s26] sm:$0xff] %v342_v14  ;;  %v520_v15 = vpop.f32.mrb[0].mxu1 }
 0x106   : > { %364 = vst [vmem:[%s781_s26 + $0x18] sm:$0xff] %v520_v15  ;;  %v352_v16 = vpop.f32.mrb[1].mxu1 }
 0x107   : > { %363 = vst [vmem:[%s781_s26 + $0x10] sm:$0xff] %v352_v16 }
 0x108 PF: > { %s365_s28 = sld [smem:[#allocation3 + %s667_s22]] }
 0x10e   : > { %p501_p4 = scmp.gt.s32.totalorder %s365_s28, 0 }
 0x10f   : > { %v679_v17 = vmov (!%p501_p4), 0.0  }
 0x110   : > { %369 = sbr.rel (%p501_p4) target bundleno = 279 (0x117), region = 40  ;;  %370 = vst [vmem:[%s781_s26] sm:$0xff] (!%p501_p4), %v679_v17  ;;  %371 = vst [vmem:[%s781_s26 + $0x8] sm:$0xff] (!%p501_p4), %v679_v17 }
 0x111   : > { %372 = vst [vmem:[%s781_s26 + $0x10] sm:$0xff] (!%p501_p4), %v679_v17  ;;  %373 = vst [vmem:[%s781_s26 + $0x18] sm:$0xff] (!%p501_p4), %v679_v17 }
 0x117 PF: > { %s507_s30 = sshll.u32 %s667_s22, 9  ;;  %s390_s11 = sshll.u32 %s781_s26, 4  ;;  %s803_s11 = int_to_ptr.vmem [resolvable:$true] %s390_s11 }
 0x118   : > { %s800_s10 = scalar_lea.hbm %s857_s4, %s507_s30  ;;  %s807_s12 = scalar_lea.sflag [#allocation5], %s202_s7 }
 0x119   : > { %s595_s13 = scalar_lea.vmem %s803_s11, 512  ;;  %s680_s22 = smov [#allocation4]  }
 0x11a   : > { %p596_p5 = scmp.ne.s32.totalorder %s803_s11, %s595_s13  ;;  %s599_s14 = sshll.u32 %s680_s22, 4  ;;  %s600_s14 = int_to_ptr.vmem [resolvable:$false] %s599_s14 }
 0x11b   : > { %s601_s15 = scalar_lea.vmem %s600_s14, 1024  ;;  %p602_p8 = scmp.lt.s32.totalorder %s803_s11, %s600_s14 }
 0x11c   : > { %p597_p6 = pnand %p596_p5, %p751_p9  ;;  %p603_p10 = scmp.lt.s32.totalorder %s601_s15, %s595_s13 }
 0x11e   : > { %p598_p7 = pneg %p597_p6  ;;  %p604_p11 = por %p603_p10, %p602_p8 }
 0x120   : > { %p605_p12 = pnand %p604_p11, %p598_p7 }
 0x122   : > { %608 = shalt.err (!%p605_p12)
}
 0x123   : > { %s609_s7 = scalar_lea.hbm %s800_s10, 512  ;;  %s613_s18 = scalar_lea.hbm %s857_s4, 1024 }
 0x124   : > { %p610_p0 = scmp.ne.s32.totalorder %s800_s10, %s609_s7  ;;  %p614_p3 = scmp.lt.u32.totalorder %s800_s10, %s857_s4 }
 0x125   : > { %p615_p4 = scmp.lt.u32.totalorder %s613_s18, %s609_s7  ;;  %p617_p6 = scmp.lt.u32.totalorder %s609_s7, %s800_s10 }
 0x126   : > { %p611_p1 = pnand %p610_p0, %p751_p9 }
 0x127   : > { %p616_p5 = por %p615_p4, %p614_p3 }
 0x128   : > { %p612_p2 = pneg %p611_p1 }
 0x129   : > { %p618_p7 = por %p617_p6, %p616_p5 }
 0x12b   : > { %p619_p8 = pnand %p618_p7, %p612_p2 }
 0x12d   : > { %622 = shalt.err (!%p619_p8)
}
 0x12e   : > { %s681_s26 = smov 128   ;;  %s682_s28 = smov 8  }
 0x12f   : > { %523 = dma.vmem_to_hbm [thread:$0]  (%p751_p9), %s803_s11, 512, %s800_s10, %s807_s12, %s681_s26, %s681_s26, %s682_s28  }
 0x130 PF: > { %p529_p10 = scmp.ge.s32.totalorder %s675_s24, 2  ;;  %s405_s30 = sand.u32 1, %s655_s20  }
 0x131   : > { %s406_s8 = scalar_lea.sflag [#allocation5], %s405_s30 }
 0x132   : > { %p526_p11 = pnand %p529_p10, %p758_p13 }
 0x134   : > { %650 = dma.done.wait (!%p526_p11), %s406_s8, 512  }
 0x135   : > { %652 = vsyncadd (!%p526_p11), %s406_s8, 4294966784  ;;  %s23_s24 = sadd.s32 1, %s675_s24   ;;  %s860_s20 = smov %s659_s21 }
 0x136   : > { %p20_p12 = scmp.ge.s32.totalorder %s23_s24, 4   ;;  %s861_s21 = smov %s663_s0 }
 0x137   : > { %s862_s0 = smov %s764_s6  ;;  %s863_s22 = smov %s671_s23 }
 0x138   : > { %s864_s23 = smov %s866_s27  ;;  %22 = sbr.rel (!%p20_p12) target bundleno = 19 (0x13), region = 81 }
 0x13f   :  { %411 = vsyncpa [#allocation5], 1 }
 0x140   :  { %413 = vsyncpa [#allocation5 + $0x1], 1 }

</bundles_post_ra>
